<compile_context>
chip_gen: v7x
topology: tpu7x:2x2x1
jax: 0.10.0
libtpu: 0.0.40
codegen_flags: <defaults>
</compile_context>

<pallas_src>
import functools

import jax
import jax.numpy as jnp
from jax.experimental import pallas as pl
from jax.experimental.pallas import tpu as pltpu


def _round_up(v, m):
    return (v + m - 1) // m * m


def _largest_divisor_tile(total, granule, target):
    """Largest multiple of `granule` that divides `total` and is <= target."""
    best = granule
    t = granule
    limit = min(target, total)
    while t <= limit:
        if total % t == 0:
            best = t
        t += granule
    return best


# ---------------------------------------------------------------------------
# Stage 1: xw = x @ weight  (small (N, D_in) x (D_in, D_out_pad) product)
# ---------------------------------------------------------------------------
def _xw_kernel(x_ref, w_ref, xw_ref, *, compute_dtype):
    xw = jnp.dot(
        x_ref[...].astype(compute_dtype),
        w_ref[...].astype(compute_dtype),
        preferred_element_type=jnp.float32,
    )
    xw_ref[...] = xw.astype(xw_ref.dtype)


# ---------------------------------------------------------------------------
# Stage 2: out = relu(support @ xw)
#   grid = (row tiles, N-reduction tiles); xw resident, out_ref is the
#   accumulator (init at k==0, ReLU at last k).
# ---------------------------------------------------------------------------
def _gcn_kernel(sup_ref, xw_ref, out_ref, *, tk, compute_dtype):
    k = pl.program_id(1)

    @pl.when(k == 0)
    def _():
        out_ref[...] = jnp.zeros_like(out_ref)

    start = pl.multiple_of(k * tk, 128)
    xw_blk = xw_ref[pl.ds(start, tk), :]            # slice of the resident xw
    out_ref[...] += jnp.dot(
        sup_ref[...].astype(compute_dtype),          # cast the tile in-kernel
        xw_blk,
        preferred_element_type=jnp.float32,
    )

    @pl.when(k == pl.num_programs(1) - 1)
    def _():
        out_ref[...] = jnp.maximum(out_ref[...], 0.0)


def graph_convolution(
    x,
    weight,
    support,
    *,
    tile_m=512,
    tile_k=2048,
    compute_dtype=jnp.bfloat16,
    vmem_limit_bytes=48 * 1024 * 1024,
):
    """Pallas TPU implementation of GraphConvolution.forward in eval mode.

    Returns relu(support @ (x @ weight)) as float32, matching the PyTorch
    module with activation=True, bias=False, featureless=False.
    Pass a bf16 `support` (pre-cast once, reused across layers) to halve the
    dominant HBM stream; otherwise the f32 support is cast per-tile in-kernel.
    """
    n, d_in = x.shape
    d_out = weight.shape[1]
    assert support.shape == (n, n)

    lane = 128
    d_out_pad = _round_up(d_out, lane)   # lane-dense output / MXU width
    k_pad = _round_up(n, lane)           # reduction length (cols of support / rows of xw)
    m_pad = _round_up(n, 16)             # output rows (bf16 sublane packing)

    # Tiles are divisors of the minimally padded dims (no over-padding).
    tm_target = min(tile_m, m_pad)
    if m_pad >= 32:                       # keep >=2 row tiles so "parallel" axis
        tm_target = min(tm_target, max(16, m_pad // 2))  # shards across 2 TCs (v7x)
    tm = _largest_divisor_tile(m_pad, 16, tm_target)
    tk = _largest_divisor_tile(k_pad, lane, min(tile_k, k_pad))
    tk1 = _largest_divisor_tile(k_pad, lane, 512)   # stage-1 row tile

    f32 = jnp.float32
    x_p = x.astype(f32)
    if k_pad != n:
        x_p = jnp.pad(x_p, ((0, k_pad - n), (0, 0)))
    w_p = weight.astype(f32)
    if d_out_pad != d_out:
        w_p = jnp.pad(w_p, ((0, 0), (0, d_out_pad - d_out)))
    sup_p = support                       # keep caller dtype; cast happens in-kernel
    if m_pad != n or k_pad != n:
        sup_p = jnp.pad(sup_p, ((0, m_pad - n), (0, k_pad - n)))

    # ---- Stage 1: xw (held in compute_dtype; padded rows of x are zero -> xw rows zero)
    xw_p = pl.pallas_call(
        functools.partial(_xw_kernel, compute_dtype=compute_dtype),
        out_shape=jax.ShapeDtypeStruct((k_pad, d_out_pad), compute_dtype),
        grid=(k_pad // tk1,),
        in_specs=[
            pl.BlockSpec((tk1, d_in), lambda i: (i, 0)),
            pl.BlockSpec((d_in, d_out_pad), lambda i: (0, 0)),
        ],
        out_specs=pl.BlockSpec((tk1, d_out_pad), lambda i: (i, 0)),
        compiler_params=pltpu.CompilerParams(
            dimension_semantics=("parallel",),
            vmem_limit_bytes=vmem_limit_bytes,
        ),
    )(x_p, w_p)

    # ---- Stage 2: relu(support @ xw); xw resident, out_ref accumulates over k.
    out_p = pl.pallas_call(
        functools.partial(_gcn_kernel, tk=tk, compute_dtype=compute_dtype),
        out_shape=jax.ShapeDtypeStruct((m_pad, d_out_pad), jnp.float32),
        grid=(m_pad // tm, k_pad // tk),
        in_specs=[
            # Dominant N^2 stream: streamed tile-by-tile (default double buffer).
            pl.BlockSpec((tm, tk), lambda i, k: (i, k)),
            # xw: whole-array block, constant index map -> DMA'd once, resident.
            pl.BlockSpec((k_pad, d_out_pad), lambda i, k: (0, 0)),
        ],
        out_specs=pl.BlockSpec((tm, d_out_pad), lambda i, k: (i, 0)),
        compiler_params=pltpu.CompilerParams(
            dimension_semantics=("parallel", "arbitrary"),
            vmem_limit_bytes=vmem_limit_bytes,
        ),
    )(sup_p, xw_p)

    return out_p[:n, :d_out]


if __name__ == "__main__":
    key = jax.random.PRNGKey(0)

    def _q(a):  # mimic the bf16 MXU operands with f32 accumulation
        return a.astype(jnp.bfloat16).astype(jnp.float32)

    # ---- Test 1: small, aligned-ish shapes consistent with the module's forward.
    N, input_dim, output_dim = 16, 32, 8
    kx, kw, ks, key = jax.random.split(key, 4)
    x = jax.random.normal(kx, (N, input_dim), dtype=jnp.float32)
    weight = jax.random.normal(kw, (input_dim, output_dim), dtype=jnp.float32)
    support = jax.random.normal(ks, (N, N), dtype=jnp.float32)

    out = graph_convolution(x, weight, support)
    jax.block_until_ready(out)
    assert out.shape == (N, output_dim)

    xw_ref = _q(x) @ _q(weight)
    ref = jnp.maximum(_q(support) @ _q(xw_ref), 0.0)
    assert jnp.allclose(out, ref, atol=1e-2, rtol=1e-2)
    # Loose sanity check against pure-f32 math (module semantics).
    ref_f32 = jnp.maximum(support @ (x @ weight), 0.0)
    assert jnp.allclose(out, ref_f32, atol=0.5, rtol=0.05)

    # ---- Test 2: awkward (non-aligned) N to exercise padding / divisor tiling.
    N2, d_in2, d_out2 = 200, 48, 24
    kx2, kw2, ks2, key = jax.random.split(key, 4)
    x2 = jax.random.normal(kx2, (N2, d_in2), dtype=jnp.float32)
    w2 = jax.random.normal(kw2, (d_in2, d_out2), dtype=jnp.float32)
    sup2 = jax.random.normal(ks2, (N2, N2), dtype=jnp.float32)

    out2 = graph_convolution(x2, w2, sup2)
    jax.block_until_ready(out2)
    assert out2.shape == (N2, d_out2)

    xw2_ref = _q(x2) @ _q(w2)
    ref2 = jnp.maximum(_q(sup2) @ _q(xw2_ref), 0.0)
    assert jnp.allclose(out2, ref2, atol=1e-2, rtol=1e-2)

    print("KERNEL_OK")
</pallas_src>

<mosaic_0001>
module attributes {stable_mosaic.version = 11 : i64} {
  func.func @_xw_kernel(%arg0: i32, %arg1: memref<128x32xf32, #tpu.memory_space<vmem>>, %arg2: memref<32x128xf32, #tpu.memory_space<vmem>>, %arg3: memref<128x128xbf16, #tpu.memory_space<vmem>>) attributes {dimension_semantics = [#tpu.dimension_semantics<parallel>], iteration_bounds = array<i64: 1>, scalar_prefetch = 0 : i64, scratch_operands = 0 : i64, tpu.core_type = #tpu.core_type<tc>, window_params = [{transform_indices = @transform_0, window_bounds = array<i64: 128, 32>}, {pipeline_mode = #tpu.pipeline_mode<synchronous>, transform_indices = @transform_1, window_bounds = array<i64: 32, 128>}, {transform_indices = @transform_2, window_bounds = array<i64: 128, 128>}]} {
    %c0 = arith.constant 0 : index
    %c0_0 = arith.constant 0 : index
    %0 = vector.load %arg1[%c0, %c0_0] : memref<128x32xf32, #tpu.memory_space<vmem>>, vector<128x32xf32>
    %1 = arith.truncf %0 : vector<128x32xf32> to vector<128x32xbf16>
    %c0_1 = arith.constant 0 : index
    %c0_2 = arith.constant 0 : index
    %2 = vector.load %arg2[%c0_1, %c0_2] : memref<32x128xf32, #tpu.memory_space<vmem>>, vector<32x128xf32>
    %3 = arith.truncf %2 : vector<32x128xf32> to vector<32x128xbf16>
    %cst = arith.constant dense<0.000000e+00> : vector<128x128xf32>
    %4 = tpu.matmul %1, %3, %cst {dimension_numbers = #tpu.dot_dimension_numbers<[1], [0], [0], [1], [0, 0, 1, 1], [], []>} : vector<128x32xbf16>, vector<32x128xbf16>, vector<128x128xf32> -> vector<128x128xf32>
    %5 = arith.truncf %4 : vector<128x128xf32> to vector<128x128xbf16>
    %c0_3 = arith.constant 0 : index
    %c0_4 = arith.constant 0 : index
    %6 = vector.load %arg3[%c0_3, %c0_4] : memref<128x128xbf16, #tpu.memory_space<vmem>>, vector<128x128xbf16>
    tpu.vector_store %arg3[%c0_3, %c0_4], %5 {strides = array<i32>} : memref<128x128xbf16, #tpu.memory_space<vmem>>, vector<128x128xbf16>,
    return
  }
  func.func @transform_0(%arg0: i32) -> (i32, i32) {
    %c0_i32 = arith.constant 0 : i32
    %c0_i32_0 = arith.constant 0 : i32
    return %arg0, %c0_i32 : i32, i32
  }
  func.func @transform_1(%arg0: i32) -> (i32, i32) {
    %c0_i32 = arith.constant 0 : i32
    %c0_i32_0 = arith.constant 0 : i32
    %c0_i32_1 = arith.constant 0 : i32
    return %c0_i32, %c0_i32_0 : i32, i32
  }
  func.func @transform_2(%arg0: i32) -> (i32, i32) {
    %c0_i32 = arith.constant 0 : i32
    %c0_i32_0 = arith.constant 0 : i32
    return %arg0, %c0_i32 : i32, i32
  }
}

</mosaic_0001>

<bundles_post_ra>
// kernel: tpu_custom_call.1
= control target key start
LH: loop header
LB: loop body
LE: loop exit
PB: predicated region body
PF: predicated region fallthrough
CT: control target
= control target key end

     0   :  { %vm43_vm0 = vcmask 261120   ;;  %s507_s0 = inlined_call_operand.vmem [shape: f32[128,32], index: 0, kind: input, shape index: {}]   ;;  %s508_s1 = inlined_call_operand.vmem [shape: f32[32,128], index: 1, kind: input, shape index: {}]   ;;  %s509_s2 = inlined_call_operand.hbm [shape: bf16[128,128], index: 2, kind: output, shape index: {}]  }
   0x1   :  { %v37_v0 = vld [vmem:[%s508_s1] sm:$0xff]  ;;  %v38_v1 = vld [vmem:[%s508_s1 + $0x8] sm:$0xff]  ;;  %v39_v2 = vld [vmem:[%s508_s1 + $0x10] sm:$0xff] }
   0x2   :  { %v41_v3 = vpack.c.bf16 %v38_v1, %v37_v0  ;;  %v40_v4 = vld [vmem:[%s508_s1 + $0x18] sm:$0xff]  ;;  %v13_v5 = vld [vmem:[%s507_s0] sm:$0xff]  ;;  %v14_v6 = vld [vmem:[%s507_s0 + $0x8] sm:$0xff] }
   0x3   :  { %v42_v7 = vpack.c.bf16 %v40_v4, %v39_v2  ;;  %v29_v8 = vpack.c.bf16 %v14_v6, %v13_v5  ;;  %v21_v9 = vld [vmem:[%s507_s0 + $0x40] sm:$0xff]  ;;  %v22_v10 = vld [vmem:[%s507_s0 + $0x48] sm:$0xff]  ;;  %v15_v12 = vld [vmem:[%s507_s0 + $0x10] sm:$0xff] }
   0x4   :  { %358 = vmatprep.subr.bf16.mxu0 %v41_v3  ;;  %378 = vmatprep.subr.bf16.mxu1 %v41_v3  ;;  %v33_v11 = vpack.c.bf16 %v22_v10, %v21_v9  ;;  %v16_v13 = vld [vmem:[%s507_s0 + $0x18] sm:$0xff]  ;;  %v23_v14 = vld [vmem:[%s507_s0 + $0x50] sm:$0xff]  ;;  %v17_v16 = vld [vmem:[%s507_s0 + $0x20] sm:$0xff] }
   0x5   :  { %359 = vmatpush3.bf16.msra.mxu0 %v41_v3  ;;  %380 = vmatpush3.bf16.msra.mxu1 %v41_v3  ;;  %v24_v15 = vld [vmem:[%s507_s0 + $0x58] sm:$0xff]  ;;  %v18_v17 = vld [vmem:[%s507_s0 + $0x28] sm:$0xff]  ;;  %v25_v18 = vld [vmem:[%s507_s0 + $0x60] sm:$0xff] }
   0x6   :  { %360 = vmatprep.subr.bf16.mxu0 %v42_v7  ;;  %379 = vmatprep.subr.bf16.mxu1 %v42_v7  ;;  %v26_v19 = vld [vmem:[%s507_s0 + $0x68] sm:$0xff] }
   0x7   :  { %362 = vmatprep.mubr.msk.bf16.mxu0 %vm43_vm0, %v29_v8  ;;  %370 = vmatprep.mubr.msk.bf16.mxu1 %vm43_vm0, %v33_v11 }
   0x8   :  { %7 = vsyncpa [#allocation3], 0  ;;  %v30_v20 = vpack.c.bf16 %v16_v13, %v15_v12  ;;  %v34_v21 = vpack.c.bf16 %v24_v15, %v23_v14  ;;  %v31_v22 = vpack.c.bf16 %v18_v17, %v17_v16  ;;  %v35_v23 = vpack.c.bf16 %v26_v19, %v25_v18  ;;  %v19_v24 = vld [vmem:[%s507_s0 + $0x30] sm:$0xff]  ;;  %v20_v25 = vld [vmem:[%s507_s0 + $0x38] sm:$0xff] }
   0x9   :  { %361 = vmatpush3.bf16.msra.mxu0 %v42_v7  ;;  %381 = vmatpush3.bf16.msra.mxu1 %v42_v7  ;;  %v27_v26 = vld [vmem:[%s507_s0 + $0x70] sm:$0xff]  ;;  %v28_v27 = vld [vmem:[%s507_s0 + $0x78] sm:$0xff]  ;;  %v32_v28 = vpack.c.bf16 %v20_v25, %v19_v24  ;;  %s409_s0 = smov [#allocation2]  }
   0xa   :  { %v36_v29 = vpack.c.bf16 %v28_v27, %v27_v26  ;;  %s250_s20 = sshll.u32 %s409_s0, 4  ;;  %s251_s20 = int_to_ptr.vmem [resolvable:$true] %s250_s20 }
   0xb   :  { %s385_s21 = scalar_lea.vmem %s251_s20, 1024  ;;  %p390_p1 = scmp.lt.s32.totalorder %s251_s20, %s251_s20 }
   0xc   :  { %363 = vmatmul.mubr.msk.bf16.vlgmr.msra.gmra.mrb[0].mxu0 %vm43_vm0, %v30_v20  ;;  %371 = vmatmul.mubr.msk.bf16.vlgmr.msra.gmra.mrb[0].mxu1 %vm43_vm0, %v34_v21  ;;  %p386_p0 = scmp.ne.s32.totalorder %s251_s20, %s385_s21  ;;  %p391_p2 = scmp.lt.s32.totalorder %s385_s21, %s385_s21 }
   0xd   :  { %366 = vmatprep.mubr.msk.bf16.mxu0 %vm43_vm0, %v31_v22  ;;  %374 = vmatprep.mubr.msk.bf16.mxu1 %vm43_vm0, %v35_v23 }
   0xe   :  { %p392_p3 = por %p391_p2, %p390_p1 }
  0x10   :  { %p393_p4 = pnand %p392_p3, %p386_p0 }
  0x14   :  { %367 = vmatmul.mubr.msk.bf16.gmra.mrb[4].mxu0 %vm43_vm0, %v32_v28  ;;  %375 = vmatmul.mubr.msk.bf16.gmra.mrb[4].mxu1 %vm43_vm0, %v36_v29 }
  0xdf   :  { %v364_v30 = vpop.f32.mrb[0].mxu0  ;;  %v372_v31 = vpop.f32.mrb[0].mxu1 }
  0xe0   :  { %v102_v32 = vpop.f32.mrb[1].mxu0  ;;  %v134_v33 = vpop.f32.mrb[1].mxu1 }
  0xe1   :  { %v365_v34 = vpop.f32.mrb[2].mxu0  ;;  %v373_v35 = vpop.f32.mrb[2].mxu1 }
  0xe2   :  { %v309_v36 = vpack.c.bf16 %v365_v34, %v364_v30  ;;  %v329_v37 = vpack.c.bf16 %v373_v35, %v372_v31  ;;  %v105_v38 = vpop.f32.mrb[3].mxu0  ;;  %v137_v39 = vpop.f32.mrb[3].mxu1 }
  0xe3   :  { %v304_v40 = vpack.c.bf16 %v105_v38, %v102_v32  ;;  %v324_v41 = vpack.c.bf16 %v137_v39, %v134_v33 }
  0xe4   :  { %341 = vst [vmem:[#allocation2 + $0x8] sm:$0xff] %v309_v36   ;;  %345 = vst [vmem:[#allocation2 + $0x28] sm:$0xff] %v329_v37  }
  0xe5   :  { %305 = vst [vmem:[#allocation2] sm:$0xff] %v304_v40   ;;  %344 = vst [vmem:[#allocation2 + $0x20] sm:$0xff] %v324_v41  }
  0xe7   :  { %v368_v42 = vpop.f32.mrb[4].mxu0  ;;  %v376_v43 = vpop.f32.mrb[4].mxu1 }
  0xe8   :  { %v118_v44 = vpop.f32.mrb[5].mxu0  ;;  %v150_v45 = vpop.f32.mrb[5].mxu1 }
  0xe9   :  { %v369_v46 = vpop.f32.mrb[6].mxu0  ;;  %v377_v47 = vpop.f32.mrb[6].mxu1 }
  0xea   :  { %v319_v48 = vpack.c.bf16 %v369_v46, %v368_v42  ;;  %v339_v49 = vpack.c.bf16 %v377_v47, %v376_v43  ;;  %v121_v50 = vpop.f32.mrb[7].mxu0  ;;  %v153_v51 = vpop.f32.mrb[7].mxu1 }
  0xeb   :  { %v314_v52 = vpack.c.bf16 %v121_v50, %v118_v44  ;;  %v334_v53 = vpack.c.bf16 %v153_v51, %v150_v45 }
  0xec   :  { %343 = vst [vmem:[#allocation2 + $0x18] sm:$0xff] %v319_v48   ;;  %347 = vst [vmem:[#allocation2 + $0x38] sm:$0xff] %v339_v49  }
  0xed   :  { %342 = vst [vmem:[#allocation2 + $0x10] sm:$0xff] %v314_v52   ;;  %346 = vst [vmem:[#allocation2 + $0x30] sm:$0xff] %v334_v53  }
  0xee   :  { %396 = shalt.err (!%p393_p4)
}
  0xef   :  { %s397_s24 = scalar_lea.hbm %s509_s2, 1024 }
  0xf0   :  { %p398_p5 = scmp.ne.s32.totalorder %s509_s2, %s397_s24  ;;  %p401_p6 = scmp.lt.u32.totalorder %s397_s24, %s509_s2 }
  0xf2   :  { %p403_p7 = pnand %p401_p6, %p398_p5 }
  0xf4   :  { %406 = shalt.err (!%p403_p7)
}
  0xf5   :  { %s410_s28 = smov 64   ;;  %s411_s29 = smov 4  }
  0xf6   :  { %256 = dma.vmem_to_hbm [thread:$0]  %s251_s20, 1024, %s509_s2, [#allocation3], %s410_s28, %s410_s28, %s411_s29  }
  0xf7   :  { %407 = dma.done.wait [#allocation3], 1024  }
  0xf8   :  { %408 = vsyncadd [#allocation3], 4294966272 }
  0xf9   :  { %260 = vsyncpa [#allocation3], 1 }

</bundles_post_ra>
